<compile_context>
chip_gen: v7x
topology: tpu7x:2x2x1
jax: 0.10.0
libtpu: 0.0.40
codegen_flags: <defaults>
</compile_context>

<pallas_src>
import math
import functools

import jax
import jax.numpy as jnp
from jax import lax
from jax.experimental import pallas as pl
from jax.experimental.pallas import tpu as pltpu


_SMALL_B = 8      # b <= this -> VPU pairwise-product path
_MAX_TK = 2048    # cap on the reduction (c*d) tile


def _round_up(x, m):
    return ((x + m - 1) // m) * m


def _epilogue(r, off, pwr, inv_denom):
    # Specialized at trace time: skip +off when off==0, skip the power when
    # pwr==1; multiply by a precomputed reciprocal instead of dividing.
    if off != 0.0:
        r = r + jnp.float32(off)
    if pwr != 1:
        r = lax.integer_pow(r, pwr)      # stays on the VPU, no EUP
    return r * jnp.float32(inv_denom)


def _gram_kernel_mxu(x_ref, o_ref, *, off, pwr, inv_denom):
    """Generic path: batched Gram on the MXU, accumulated directly in o_ref.

    x_ref: (TA, B, TK) input feature K-tile
    o_ref: (TA, B, B)  f32 output block, resident across the K grid axis
    """
    k = pl.program_id(1)

    @pl.when(k == 0)
    def _():
        o_ref[...] = jnp.zeros_like(o_ref)

    x = x_ref[...]
    # Batched Gram without materializing x.T: contract the last (K) dim of both
    # operands, batch over the leading (TA) dim.  Lowers straight to the MXU.
    o_ref[...] += lax.dot_general(
        x, x,
        dimension_numbers=(((2,), (2,)), ((0,), (0,))),
        preferred_element_type=jnp.float32)

    @pl.when(k == pl.num_programs(1) - 1)
    def _():
        o_ref[...] = _epilogue(o_ref[...], off, pwr, inv_denom)


def _gram_kernel_vpu(x_ref, o_ref, *, b, off, pwr, inv_denom):
    """Small-b path (b <= 8): pairwise row products on the VPU + lane reduce.

    Avoids b x tk MXU slivers; the kernel stays purely HBM-bound.
    """
    k = pl.program_id(1)

    @pl.when(k == 0)
    def _():
        o_ref[...] = jnp.zeros_like(o_ref)

    x = x_ref[...].astype(jnp.float32)               # (TA, B, TK)
    cols = []
    for j in range(b):                                # static unroll, b small
        xj = x[:, j:j + 1, :]                         # (TA, 1, TK)
        cols.append(jnp.sum(x * xj, axis=-1, keepdims=True))   # (TA, B, 1)
    o_ref[...] += jnp.concatenate(cols, axis=-1)      # (TA, B, B)

    @pl.when(k == pl.num_programs(1) - 1)
    def _():
        o_ref[...] = _epilogue(o_ref[...], off, pwr, inv_denom)


def _vmem_budget_bytes():
    """(tile budget, vmem_limit) sized per generation; 64-MiB-safe fallback."""
    cap = 64 * 1024 * 1024
    try:
        info = pltpu.get_tpu_info()
        cap = int(getattr(info, "vmem_capacity_bytes", cap))
    except Exception:
        pass
    if cap >= 100 * 1024 * 1024:                 # v5e / v6e: 128 MiB VMEM
        return 96 * 1024 * 1024, 112 * 1024 * 1024
    return 40 * 1024 * 1024, 48 * 1024 * 1024    # v7x: 64 MiB VMEM


def kernel_matrix_batch(inp, off=0, pwr=1, *, use_bf16_inputs=False):
    """inp: (a, b, c, d) NCHW. Returns (a, b, b) float32."""
    a, b, c, d = inp.shape
    cd = c * d
    pwr = int(pwr)
    if pwr < 0 or pwr > cd:
        raise ValueError(f"pwr={pwr} must lie in [0, c*d={cd}] (comb would be 0).")

    comb = math.comb(cd, pwr)
    try:
        inv_denom = 1.0 / float(comb)
    except OverflowError:
        # comb overflows float64: build the reciprocal in log space.
        inv_denom = math.exp(-(math.lgamma(cd + 1) - math.lgamma(pwr + 1)
                               - math.lgamma(cd - pwr + 1)))

    feats = inp.reshape(a, b, cd)                 # glue reshape in plain JAX
    if use_bf16_inputs:
        # Opt-in: halves HBM bytes / doubles MXU rate; no longer bit-matches f32.
        feats = feats.astype(jnp.bfloat16)
    itemsize = feats.dtype.itemsize
    sublane = 8 * (4 // itemsize)                 # f32 -> 8, bf16 -> 16

    budget_bytes, vmem_limit = _vmem_budget_bytes()

    # ---- K tile: always a multiple of 128, <= _MAX_TK, fits the budget ------
    out_bytes = _round_up(b, 8) * _round_up(b, 128) * 4      # padded (b, b) f32
    tk = 128
    for cand in (_MAX_TK, 1024, 512, 256, 128):
        tk = min(cand, _round_up(cd, 128))
        in_bytes = _round_up(b, sublane) * tk * itemsize
        if 2 * in_bytes + 2 * out_bytes <= budget_bytes:
            break

    padded_cd = _round_up(cd, tk)
    if padded_cd != cd:
        # Zero columns contribute nothing to the Gram matrix.
        feats = jnp.pad(feats, ((0, 0), (0, 0), (0, padded_cd - cd)))

    # ---- batch tile: VMEM-budgeted, cdiv blocking, megacore-aware -----------
    in_bytes = _round_up(b, sublane) * tk * itemsize
    per_ta_bytes = 2 * in_bytes + 2 * out_bytes   # dbl-buffered input + output
    ta = max(1, min(a, budget_bytes // max(per_ta_bytes, 1), 512))
    if a >= 2:
        ta = min(ta, (a + 1) // 2)   # >= 2 batch blocks -> both v7x TCs busy
    ta = max(1, ta)

    grid = (pl.cdiv(a, ta), padded_cd // tk)      # (batch: parallel, K: last)

    if b <= _SMALL_B:
        kernel = functools.partial(_gram_kernel_vpu, b=b, off=float(off),
                                   pwr=pwr, inv_denom=float(inv_denom))
    else:
        kernel = functools.partial(_gram_kernel_mxu, off=float(off),
                                   pwr=pwr, inv_denom=float(inv_denom))

    return pl.pallas_call(
        kernel,
        out_shape=jax.ShapeDtypeStruct((a, b, b), jnp.float32),
        grid_spec=pltpu.PrefetchScalarGridSpec(
            num_scalar_prefetch=0,
            grid=grid,
            in_specs=[pl.BlockSpec((ta, b, tk), lambda i, k: (i, 0, k))],
            out_specs=pl.BlockSpec((ta, b, b), lambda i, k: (i, 0, 0)),
        ),
        compiler_params=pltpu.CompilerParams(
            dimension_semantics=("parallel", "arbitrary"),
            vmem_limit_bytes=vmem_limit,
        ),
        cost_estimate=pl.CostEstimate(
            flops=2 * a * b * b * cd,
            transcendentals=0,
            bytes_accessed=a * b * cd * itemsize + a * b * b * 4,
        ),
    )(feats)


class KernelCalc:
    """JAX/Pallas port of the PyTorch KernelCalc module."""

    def __init__(self, input_feature_batch, off=0, pwr=1):
        self.off = off
        self.pwr = pwr
        # .detach() equivalent: stop_gradient on the precomputed target.
        self.target = jax.lax.stop_gradient(
            kernel_matrix_batch(input_feature_batch, self.off, self.pwr))

    def __call__(self, inp):
        # forward is the identity
        return inp


if __name__ == "__main__":
    key = jax.random.PRNGKey(0)
    # Small shapes consistent with the module: batch=2, channels=4, spatial=16x16
    x = jax.random.normal(key, (2, 4, 16, 16), dtype=jnp.float32)

    module = KernelCalc(x, off=0, pwr=1)

    # Pallas result computed in __init__
    target = jax.block_until_ready(module.target)

    # Forward pass (identity)
    out = jax.block_until_ready(module(x))

    # Pure-JAX reference check for the Pallas Gram-matrix kernel.
    a, b, c, d = x.shape
    feats = x.reshape(a, b, c * d)
    ref = jnp.einsum("aik,ajk->aij", feats, feats)
    ref = (ref + 0.0) ** 1 / float(math.comb(c * d, 1))
    assert jnp.allclose(target, ref, atol=1e-4, rtol=1e-4), "target mismatch"
    assert jnp.array_equal(out, x), "forward must be identity"

    print("KERNEL_OK")
</pallas_src>

<mosaic_0001>
module attributes {stable_mosaic.version = 11 : i64} {
  func.func @_gram_kernel_vpu(%arg0: i32, %arg1: i32, %arg2: memref<1x4x256xf32, #tpu.memory_space<vmem>>, %arg3: memref<1x4x4xf32, #tpu.memory_space<vmem>>) attributes {dimension_semantics = [#tpu.dimension_semantics<parallel>, #tpu.dimension_semantics<arbitrary>], iteration_bounds = array<i64: 2, 1>, scalar_prefetch = 0 : i64, scratch_operands = 0 : i64, tpu.core_type = #tpu.core_type<tc>, window_params = [{transform_indices = @transform_0, window_bounds = array<i64: 1, 4, 256>}, {transform_indices = @transform_1, window_bounds = array<i64: 1, 4, 4>}]} {
    %c0_i32 = arith.constant 0 : i32
    %0 = arith.cmpi eq, %arg1, %c0_i32 : i32
    %1 = arith.extui %0 : i1 to i32
    %c0_i32_0 = arith.constant 0 : i32
    %2 = arith.cmpi ne, %1, %c0_i32_0 : i32
    scf.if %2 {
      %cst_14 = arith.constant 0.000000e+00 : f32
      %31 = vector.broadcast %cst_14 : f32 to vector<1x4x4xf32>
      %c0_15 = arith.constant 0 : index
      %c0_16 = arith.constant 0 : index
      %c0_17 = arith.constant 0 : index
      %32 = vector.load %arg3[%c0_15, %c0_16, %c0_17] : memref<1x4x4xf32, #tpu.memory_space<vmem>>, vector<1x4x4xf32>
      tpu.vector_store %arg3[%c0_15, %c0_16, %c0_17], %31 {strides = array<i32>} : memref<1x4x4xf32, #tpu.memory_space<vmem>>, vector<1x4x4xf32>,
    } else {
    }
    %c0 = arith.constant 0 : index
    %c0_1 = arith.constant 0 : index
    %c0_2 = arith.constant 0 : index
    %3 = vector.load %arg2[%c0, %c0_1, %c0_2] : memref<1x4x256xf32, #tpu.memory_space<vmem>>, vector<1x4x256xf32>
    %4 = vector.extract_strided_slice %3 {offsets = [0, 0, 0], sizes = [1, 1, 256], strides = [1, 1, 1]} : vector<1x4x256xf32> to vector<1x1x256xf32>
    %5 = vector.broadcast %4 : vector<1x1x256xf32> to vector<1x4x256xf32>
    %6 = arith.mulf %3, %5 : vector<1x4x256xf32>
    %cst = arith.constant dense<0.000000e+00> : vector<1x4xf32>
    %7 = vector.multi_reduction <add>, %6, %cst [2] : vector<1x4x256xf32> to vector<1x4xf32>
    %8 = vector.shape_cast %7 : vector<1x4xf32> to vector<1x4x1xf32>
    %9 = vector.extract_strided_slice %3 {offsets = [0, 1, 0], sizes = [1, 1, 256], strides = [1, 1, 1]} : vector<1x4x256xf32> to vector<1x1x256xf32>
    %10 = vector.broadcast %9 : vector<1x1x256xf32> to vector<1x4x256xf32>
    %11 = arith.mulf %3, %10 : vector<1x4x256xf32>
    %cst_3 = arith.constant dense<0.000000e+00> : vector<1x4xf32>
    %12 = vector.multi_reduction <add>, %11, %cst_3 [2] : vector<1x4x256xf32> to vector<1x4xf32>
    %13 = vector.shape_cast %12 : vector<1x4xf32> to vector<1x4x1xf32>
    %14 = vector.extract_strided_slice %3 {offsets = [0, 2, 0], sizes = [1, 1, 256], strides = [1, 1, 1]} : vector<1x4x256xf32> to vector<1x1x256xf32>
    %15 = vector.broadcast %14 : vector<1x1x256xf32> to vector<1x4x256xf32>
    %16 = arith.mulf %3, %15 : vector<1x4x256xf32>
    %cst_4 = arith.constant dense<0.000000e+00> : vector<1x4xf32>
    %17 = vector.multi_reduction <add>, %16, %cst_4 [2] : vector<1x4x256xf32> to vector<1x4xf32>
    %18 = vector.shape_cast %17 : vector<1x4xf32> to vector<1x4x1xf32>
    %19 = vector.extract_strided_slice %3 {offsets = [0, 3, 0], sizes = [1, 1, 256], strides = [1, 1, 1]} : vector<1x4x256xf32> to vector<1x1x256xf32>
    %20 = vector.broadcast %19 : vector<1x1x256xf32> to vector<1x4x256xf32>
    %21 = arith.mulf %3, %20 : vector<1x4x256xf32>
    %cst_5 = arith.constant dense<0.000000e+00> : vector<1x4xf32>
    %22 = vector.multi_reduction <add>, %21, %cst_5 [2] : vector<1x4x256xf32> to vector<1x4xf32>
    %23 = vector.shape_cast %22 : vector<1x4xf32> to vector<1x4x1xf32>
    %c0_6 = arith.constant 0 : index
    %c0_7 = arith.constant 0 : index
    %c0_8 = arith.constant 0 : index
    %24 = vector.load %arg3[%c0_6, %c0_7, %c0_8] : memref<1x4x4xf32, #tpu.memory_space<vmem>>, vector<1x4x4xf32>
    %25 = tpu.concatenate %8, %13, %18, %23 in 2 : vector<1x4x1xf32>, vector<1x4x1xf32>, vector<1x4x1xf32>, vector<1x4x1xf32> -> vector<1x4x4xf32>
    %26 = arith.addf %24, %25 : vector<1x4x4xf32>
    %c0_9 = arith.constant 0 : index
    %c0_10 = arith.constant 0 : index
    %c0_11 = arith.constant 0 : index
    %27 = vector.load %arg3[%c0_9, %c0_10, %c0_11] : memref<1x4x4xf32, #tpu.memory_space<vmem>>, vector<1x4x4xf32>
    tpu.vector_store %arg3[%c0_9, %c0_10, %c0_11], %26 {strides = array<i32>} : memref<1x4x4xf32, #tpu.memory_space<vmem>>, vector<1x4x4xf32>,
    %c0_i32_12 = arith.constant 0 : i32
    %28 = arith.cmpi eq, %arg1, %c0_i32_12 : i32
    %29 = arith.extui %28 : i1 to i32
    %c0_i32_13 = arith.constant 0 : i32
    %30 = arith.cmpi ne, %29, %c0_i32_13 : i32
    scf.if %30 {
      %c0_14 = arith.constant 0 : index
      %c0_15 = arith.constant 0 : index
      %c0_16 = arith.constant 0 : index
      %31 = vector.load %arg3[%c0_14, %c0_15, %c0_16] : memref<1x4x4xf32, #tpu.memory_space<vmem>>, vector<1x4x4xf32>
      %cst_17 = arith.constant 3.906250e-03 : f32
      %32 = vector.broadcast %cst_17 : f32 to vector<1x4x4xf32>
      %33 = arith.mulf %31, %32 : vector<1x4x4xf32>
      %c0_18 = arith.constant 0 : index
      %c0_19 = arith.constant 0 : index
      %c0_20 = arith.constant 0 : index
      %34 = vector.load %arg3[%c0_18, %c0_19, %c0_20] : memref<1x4x4xf32, #tpu.memory_space<vmem>>, vector<1x4x4xf32>
      tpu.vector_store %arg3[%c0_18, %c0_19, %c0_20], %33 {strides = array<i32>} : memref<1x4x4xf32, #tpu.memory_space<vmem>>, vector<1x4x4xf32>,
    } else {
    }
    return
  }
  func.func @transform_0(%arg0: i32, %arg1: i32) -> (i32, i32, i32) {
    %c0_i32 = arith.constant 0 : i32
    %c0_i32_0 = arith.constant 0 : i32
    return %arg0, %c0_i32, %arg1 : i32, i32, i32
  }
  func.func @transform_1(%arg0: i32, %arg1: i32) -> (i32, i32, i32) {
    %c0_i32 = arith.constant 0 : i32
    %c0_i32_0 = arith.constant 0 : i32
    %c0_i32_1 = arith.constant 0 : i32
    return %arg0, %c0_i32, %c0_i32_0 : i32, i32, i32
  }
}

</mosaic_0001>

<bundles_post_ra>
// kernel: tpu_custom_call.1
= control target key start
LH: loop header
LB: loop body
LE: loop exit
PB: predicated region body
PF: predicated region fallthrough
CT: control target
= control target key end

     0   :  { %6 = vsyncpa [#allocation3], 0  ;;  %s791_s0 = inlined_call_operand.hbm [shape: f32[2,4,256], index: 0, kind: input, shape index: {}]   ;;  %s792_s1 = inlined_call_operand.hbm [shape: f32[2,4,4], index: 1, kind: output, shape index: {}]  }
   0x1   :  { %8 = vsyncpa [#allocation3 + $0x1], 0 }
   0x2   :  { %9 = vsyncpa [#allocation4], 0 }
   0x3   :  { %11 = vsyncpa [#allocation4 + $0x1], 0  ;;  %s599_s6 = smov 0   ;;  %s601_s7 = smov 0  }
   0x4   :  { %s603_s8 = smov 0   ;;  %s605_s9 = smov 0  }
   0x5   :  { %s607_s10 = smov 0   ;;  %s609_s11 = smov 0  }
   0x6 LB: > { %s394_s12 = sadd.s32 4294967295, %s584_s11   ;;  %s395_s13 = sadd.s32 4294967294, %s584_s11   ;;  %s584_s11 = sphi %s609_s11, %s17_s11   ;;  %s580_s10 = sphi %s607_s10, %s808_s10   ;;  %s576_s9 = sphi %s605_s9, %s807_s9   ;;  %s572_s8 = sphi %s603_s8, %s806_s8   ;;  %s568_s7 = sphi %s601_s7, %s805_s7   ;;  %s564_s6 = sphi %s599_s6, %s804_s6  }
   0x7   : > { %s29_s14 = sadd.s32 1, %s580_s10  ;;  %s38_s15 = sadd.s32 1, %s572_s8 }
   0x8   : > { %p31_p0 = scmp.ge.s32.totalorder %s29_s14, 2  ;;  %p45_p1 = scmp.ne.s32.totalorder %s572_s8, %s568_s7 }
   0x9   : > { %p46_p2 = scmp.eq.s32.totalorder %s584_s11, 0  ;;  %p51_p3 = scmp.ne.s32.totalorder %s568_s7, %s564_s6 }
   0xa   : > { %s810_s14 = smov (%p31_p0, %s29_s14), 0  ;;  %p52_p5 = scmp.eq.s32.totalorder %s394_s12, 0 }
   0xb   : > { %p640_p4 = por %p46_p2, %p45_p1  ;;  %s33_s17 = ssub.s32 %s580_s10, %s810_s14 }
   0xc   : > { %p75_p6 = scmp.eq.s32.totalorder %s394_s12, 1  ;;  %p36_p7 = scmp.eq.s32.totalorder %s33_s17, 0 }
   0xd   : > { %p646_p8 = por %p52_p5, %p51_p3  ;;  %p81_p10 = scmp.eq.s32.totalorder %s395_s13, 1 }
   0xe   : > { %p650_p9 = por %p75_p6, %p45_p1  ;;  %p421_p13 = scmp.lt.s32.totalorder %s584_s11, 2 }
   0xf   : > { %s655_s20 = scalar_select %p36_p7, %s572_s8, %s38_s15  }
  0x10   : > { %s796_s19 = scalar_select %p650_p9, 1, 0 }
  0x11   : > { %p657_p11 = por %p81_p10, %p51_p3  ;;  %s101_s22 = sand.u32 1, %s572_s8  }
  0x12   : > { %s398_s23 = sshll.u32 %s101_s22, 3  ;;  %s408_s24 = sshll.u32 %s580_s10, 7 }
  0x13   : > { %s797_s21 = scalar_select %p657_p11, 1, 0 }
  0x14   : > { %s668_s27 = scalar_lea.hbm %s791_s0, %s408_s24  ;;  %s105_s28 = scalar_lea.vmem [#allocation2], %s398_s23 }
  0x15   : > { %s115_s29 = sshll.u32 %s105_s28, 4  ;;  %p674_p0 = pnand %p421_p13, %p640_p4  ;;  %s670_s29 = int_to_ptr.vmem [resolvable:$true] %s115_s29 }
  0x16   : > { %s102_s2 = scalar_lea.sflag [#allocation3], %s101_s22  ;;  %s472_s3 = scalar_lea.hbm %s668_s27, 128 }
  0x17   : > { %p473_p3 = scmp.ne.s32.totalorder %s668_s27, %s472_s3  ;;  %p474_p5 = pneg %p674_p0 }
  0x18   : > { %s477_s12 = scalar_lea.hbm %s791_s0, 256  ;;  %p478_p4 = scmp.lt.u32.totalorder %s668_s27, %s791_s0 }
  0x19   : > { %p475_p6 = pnand %p474_p5, %p473_p3  ;;  %p479_p10 = scmp.lt.u32.totalorder %s477_s12, %s472_s3 }
  0x1a   : > { %p481_p12 = scmp.lt.u32.totalorder %s472_s3, %s668_s27 }
  0x1b   : > { %p476_p7 = pneg %p475_p6  ;;  %p480_p13 = por %p479_p10, %p478_p4 }
  0x1d   : > { %p482_p1 = por %p481_p12, %p480_p13 }
  0x1f   : > { %p483_p2 = pnand %p482_p1, %p476_p7 }
  0x21   : > { %486 = shalt.err (!%p483_p2)
}
  0x22   : > { %s487_s16 = scalar_lea.vmem %s670_s29, 128  ;;  %s586_s17 = smov [#allocation2]  }
  0x23   : > { %p488_p3 = scmp.ne.s32.totalorder %s670_s29, %s487_s16  ;;  %s492_s22 = sshll.u32 %s586_s17, 4  ;;  %s493_s22 = int_to_ptr.vmem [resolvable:$false] %s492_s22 }
  0x24   : > { %s494_s23 = scalar_lea.vmem %s493_s22, 256  ;;  %p495_p9 = scmp.lt.s32.totalorder %s670_s29, %s493_s22 }
  0x25   : > { %p490_p6 = pnand %p488_p3, %p474_p5  ;;  %p496_p4 = scmp.lt.s32.totalorder %s494_s23, %s487_s16 }
  0x27   : > { %p491_p11 = pneg %p490_p6  ;;  %p497_p10 = por %p496_p4, %p495_p9 }
  0x29   : > { %p498_p12 = pnand %p497_p10, %p491_p11 }
  0x2b   : > { %501 = shalt.err (!%p498_p12)
}
  0x2c   : > { %416 = dma.hbm_to_vmem [thread:$0]  (!%p674_p0), %s668_s27, 128, %s670_s29, %s102_s2  }
  0x2d   : > { %p799_p1 = scmp.lt.s32.totalorder %s584_s11, 3  ;;  %p800_p2 = scmp.ge.s32.totalorder %s584_s11, 1 }
  0x2f   : > { %p121_p5 = pnand %p800_p2, %p799_p1 }
  0x30   : > { %s710_s24 = sand.u32 (!%p121_p5), 1, %s568_s7  }
  0x31   : > { %124 = sbr.rel (%p121_p5) target bundleno = 251 (0xfb), region = 24  ;;  %s402_s25 = sshll.u32 (!%p121_p5), %s710_s24, 3 }
  0x32   : > { %s127_s26 = scalar_lea.sflag (!%p121_p5), [#allocation3], %s710_s24  ;;  %s130_s28 = scalar_lea.vmem (!%p121_p5), [#allocation2], %s402_s25 }
  0x38   : > { %555 = dma.done.wait (%p646_p8), %s127_s26, 128  }
  0x39   : > { %557 = vsyncadd (%p646_p8), %s127_s26, 4294967168  ;;  %s403_s27 = sshll.u32 %s710_s24, 2  ;;  %vm154_vm0 = vcmask 27648   ;;  %v158_v0 = vlaneseq  ;;  %v587_v1 = vmov 0.0   ;;  %v156_v11 = vld [vmem:[%s130_s28] sm:$0xff]  ;;  %vm184_vm1 = vcmask 1043456  }
  0x3a   : > { %s719_s29 = scalar_lea.vmem [#allocation5], %s403_s27  ;;  %vm284_vm2 = vcmask 7168   ;;  %vm286_vm3 = vcmask 15360   ;;  %vm288_vm4 = vcmask 23552   ;;  %s405_s18 = sshll.u32 %s576_s9, 6 }
  0x3b   : > { %155 = vst.msk [vmem:[%s719_s29] sm:$0xf] %vm154_vm0, %v587_v1  ;;  %v159_v2 = vshrl.u32 %v158_v0, 7  ;;  %s313_s30 = sshll.u32 %s719_s29, 4  ;;  %s740_s4 = scalar_lea.hbm %s792_s1, %s405_s18  ;;  %s742_s30 = int_to_ptr.vmem [resolvable:$true] %s313_s30 }
  0x3c   : > { %s300_s5 = scalar_lea.sflag [#allocation4], %s710_s24  ;;  %s502_s12 = scalar_lea.vmem %s742_s30, 64 }
  0x3d   : > { %v160_v3 = vsub.s32 0, %v159_v2  ;;  %v164_v4 = vsub.s32 4, %v159_v2  ;;  %v223_v5 = vsub.s32 2, %v159_v2  ;;  %v227_v6 = vsub.s32 6, %v159_v2  ;;  %p503_p8 = scmp.ne.s32.totalorder %s742_s30, %s502_s12  ;;  %p801_p9 = scmp.ne.s32.totalorder %s796_s19, 0 }
  0x3e   : > { %v192_v7 = vsub.s32 1, %v159_v2  ;;  %v196_v8 = vsub.s32 5, %v159_v2  ;;  %v254_v9 = vsub.s32 3, %v159_v2  ;;  %v258_v10 = vsub.s32 7, %v159_v2  ;;  %s588_s9 = smov [#allocation5]  }
  0x3f   : > { %v161_v12 = vrot.slane %v156_v11, %v160_v3  ;;  %v165_v13 = vrot.slane %v156_v11, %v164_v4  ;;  %v224_v14 = vrot.slane %v156_v11, %v223_v5  ;;  %v228_v15 = vrot.slane %v156_v11, %v227_v6  ;;  %p504_p11 = pnand %p503_p8, %p801_p9  ;;  %s506_s13 = sshll.u32 %s588_s9, 4  ;;  %s507_s13 = int_to_ptr.vmem [resolvable:$false] %s506_s13 }
  0x40   : > { %v193_v16 = vrot.slane %v156_v11, %v192_v7  ;;  %v197_v17 = vrot.slane %v156_v11, %v196_v8  ;;  %v255_v18 = vrot.slane %v156_v11, %v254_v9  ;;  %v259_v19 = vrot.slane %v156_v11, %v258_v10  ;;  %s508_s15 = scalar_lea.vmem %s507_s13, 128  ;;  %p509_p7 = scmp.lt.s32.totalorder %s742_s30, %s507_s13 }
  0x41   : > { %v171_v20 = vrot.slane %v161_v12, %v160_v3  ;;  %v175_v21 = vrot.slane %v165_v13, %v160_v3  ;;  %v234_v22 = vrot.slane %v224_v14, %v223_v5  ;;  %v238_v23 = vrot.slane %v228_v15, %v223_v5  ;;  %p505_p0 = pneg %p504_p11  ;;  %p510_p13 = scmp.lt.s32.totalorder %s508_s15, %s502_s12 }
  0x42   : > { %v203_v24 = vrot.slane %v193_v16, %v192_v7  ;;  %v207_v25 = vrot.slane %v197_v17, %v192_v7  ;;  %v265_v26 = vrot.slane %v255_v18, %v254_v9  ;;  %v269_v27 = vrot.slane %v259_v19, %v254_v9  ;;  %v283_v57 = vld [vmem:[%s719_s29] sm:$0xf] }
  0x43   : > { %v178_v28 = vcombine.low %v171_v20, %v175_v21  ;;  %v241_v29 = vcombine.low %v234_v22, %v238_v23  ;;  %p511_p3 = por %p510_p13, %p509_p7 }
  0x44   : > { %v210_v30 = vcombine.low %v203_v24, %v207_v25  ;;  %v272_v31 = vcombine.low %v265_v26, %v269_v27 }
  0x45   : > { %v180_v32 = vmul.f32 %v178_v28, %v156_v11  ;;  %v243_v33 = vmul.f32 %v241_v29, %v156_v11  ;;  %p512_p6 = pnand %p511_p3, %p505_p0 }
  0x46   : > { %v212_v34 = vmul.f32 %v210_v30, %v156_v11  ;;  %v274_v35 = vmul.f32 %v272_v31, %v156_v11 }
  0x47   : > { %v182_v36 = vcombine.high %v180_v32, %v180_v32  ;;  %v185_v37 = vsel %vm184_vm1, %v180_v32, 0.0  ;;  %v245_v38 = vcombine.high %v243_v33, %v243_v33  ;;  %v247_v39 = vsel %vm184_vm1, %v243_v33, 0.0 }
  0x48   : > { %v214_v40 = vcombine.high %v212_v34, %v212_v34  ;;  %v276_v41 = vcombine.high %v274_v35, %v274_v35  ;;  %v216_v44 = vsel %vm184_vm1, %v212_v34, 0.0  ;;  %v278_v45 = vsel %vm184_vm1, %v274_v35, 0.0 }
  0x49   : > { %v186_v42 = vsel %vm184_vm1, %v182_v36, 0.0  ;;  %v248_v43 = vsel %vm184_vm1, %v245_v38, 0.0 }
  0x4a   : > { %v187_v46 = vadd.f32 %v186_v42, %v185_v37  ;;  %v249_v47 = vadd.f32 %v248_v43, %v247_v39  ;;  %v217_v48 = vsel %vm184_vm1, %v214_v40, 0.0  ;;  %v279_v49 = vsel %vm184_vm1, %v276_v41, 0.0 }
  0x4b   : > { %v218_v50 = vadd.f32 %v217_v48, %v216_v44  ;;  %v280_v51 = vadd.f32 %v279_v49, %v278_v45 }
  0x4c   : > { %188 = vadd.xlane.f32.xlu0 %v187_v46  ;;  %250 = vadd.xlane.f32.xlu1 %v249_v47 }
  0x50   : > { %219 = vadd.xlane.f32.xlu0 %v218_v50  ;;  %281 = vadd.xlane.f32.xlu1 %v280_v51 }
  0xd9   : > { %v189_v52 = vpop.xlane.xlu0 %188  ;;  %v251_v53 = vpop.xlane.xlu1 %250 }
  0xdd   : > { %v220_v54 = vpop.xlane.xlu0 %219  ;;  %v282_v55 = vpop.xlane.xlu1 %281 }
  0xde   : > { %v285_v56 = vsel %vm284_vm2, %v189_v52, %v220_v54 }
  0xdf   : > { %v287_v58 = vsel %vm286_vm3, %v285_v56, %v251_v53 }
  0xe0   : > { %v289_v59 = vsel %vm288_vm4, %v287_v58, %v282_v55 }
  0xe1   : > { %v290_v60 = vadd.f32 %v289_v59, %v283_v57 }
  0xe3   : > { %292 = vst.msk [vmem:[%s719_s29] sm:$0xf] %vm154_vm0, %v290_v60 }
  0xea   : > { %v296_v61 = vld [vmem:[%s719_s29] sm:$0xf] }
  0xeb   : > { %v297_v62 = vmul.f32 0.00390625, %v296_v61 }
  0xed   : > { %298 = vst.msk [vmem:[%s719_s29] sm:$0xf] %vm154_vm0, %v297_v62 }
  0xee   : > { %515 = shalt.err (!%p512_p6)
}
  0xef   : > { %s516_s16 = scalar_lea.hbm %s740_s4, 64  ;;  %s520_s23 = scalar_lea.hbm %s792_s1, 128 }
  0xf0   : > { %p517_p4 = scmp.ne.s32.totalorder %s740_s4, %s516_s16  ;;  %p521_p1 = scmp.lt.u32.totalorder %s740_s4, %s792_s1 }
  0xf1   : > { %p522_p2 = scmp.lt.u32.totalorder %s520_s23, %s516_s16  ;;  %p524_p8 = scmp.lt.u32.totalorder %s516_s16, %s740_s4 }
  0xf2   : > { %p518_p10 = pnand %p517_p4, %p801_p9 }
  0xf3   : > { %p523_p5 = por %p522_p2, %p521_p1 }
  0xf4   : > { %p519_p12 = pneg %p518_p10 }
  0xf5   : > { %p525_p11 = por %p524_p8, %p523_p5 }
  0xf7   : > { %p526_p0 = pnand %p525_p11, %p519_p12 }
  0xf9   : > { %529 = shalt.err (!%p526_p0)
}
  0xfa   : > { %411 = dma.vmem_to_hbm [thread:$0]  (%p801_p9), %s742_s30, 64, %s740_s4, %s300_s5  }
  0xfb PF: > { %s325_s26 = sand.u32 1, %s564_s6   ;;  %p802_p7 = scmp.ne.s32.totalorder %s797_s21, 0 }
  0xfc   : > { %p803_p13 = scmp.ge.s32.totalorder %s584_s11, 2  ;;  %s326_s28 = scalar_lea.sflag [#allocation4], %s325_s26 }
  0xfe   : > { %p418_p3 = pnand %p803_p13, %p802_p7 }
 0x100   : > { %559 = dma.done.wait (!%p418_p3), %s326_s28, 64  }
 0x101   : > { %561 = vsyncadd (!%p418_p3), %s326_s28, 4294967232  ;;  %s17_s11 = sadd.s32 1, %s584_s11   ;;  %s804_s6 = smov %s568_s7 }
 0x102   : > { %p14_p6 = scmp.ge.s32.totalorder %s17_s11, 4   ;;  %s805_s7 = smov %s572_s8 }
 0x103   : > { %s806_s8 = smov %s655_s20  ;;  %s807_s9 = smov %s580_s10 }
 0x104   : > { %s808_s10 = smov %s810_s14  ;;  %16 = sbr.rel (!%p14_p6) target bundleno = 6 (0x6), region = 77 }
 0x10b   :  { %331 = vsyncpa [#allocation3], 1 }
 0x10c   :  { %333 = vsyncpa [#allocation3 + $0x1], 1 }
 0x10d   :  { %334 = vsyncpa [#allocation4], 1 }
 0x10e   :  { %336 = vsyncpa [#allocation4 + $0x1], 1 }

</bundles_post_ra>
